<compile_context>
chip_gen: v7x
topology: tpu7x:2x2x1
jax: 0.10.0
libtpu: 0.0.40
codegen_flags: <defaults>
</compile_context>

<pallas_src>
import jax
import jax.numpy as jnp
from jax import lax
from jax.experimental import pallas as pl
from jax.experimental.pallas import tpu as pltpu


def _attn_bank_kernel(q_ref, bank_ref, wc_ref, wq_ref, wp_ref, bias_ref,
                      attn_ref, align_ref, acc_ref):
    """One (batch-tile, bank) grid step.

    q_ref:     (bblk, T, D)    query tile (compute dtype), resident across banks
    bank_ref:  (bblk, S, D)    this bank's memory tile (compute dtype)
    wc_ref:    (D, D)          context half of this bank's linear_out, [in, out]
    wq_ref:    (D, D)          query   half of this bank's linear_out, [in, out]
    wp_ref:    (D, Dout)       this bank's slice of the final proj,    [in, out]
    bias_ref:  (1, Dout)       final proj bias (f32)
    attn_ref:  (bblk, T, Dout) output tile, written once at the last bank
    align_ref: (bblk, T, S)    this bank's attention weights (dense write per step)
    acc_ref:   (bblk*T, Dout)  f32 scratch accumulator for the projected bank-sum
    """
    n = pl.program_id(1)
    n_last = pl.num_programs(1) - 1

    q = q_ref[...]                                        # (bblk, T, D)
    m = bank_ref[...]                                     # (bblk, S, D)
    bblk, t, d = q.shape

    # scores[b, t, s] = sum_d q[b, t, d] * m[b, s, d]  (batched over b, no m.T)
    scores = lax.dot_general(
        q, m, dimension_numbers=(((2,), (2,)), ((0,), (0,))),
        preferred_element_type=jnp.float32)               # (bblk, T, S) f32

    # Softmax over the source length (statistics kept in f32).
    s_max = jnp.max(scores, axis=-1, keepdims=True)
    e = jnp.exp(scores - s_max)
    denom = jnp.sum(e, axis=-1, keepdims=True)
    align = e * pl.reciprocal(denom, approx=True)         # (bblk, T, S) f32

    # This bank's align slab is done: store it now (dense write, frees registers).
    align_ref[...] = align.astype(align_ref.dtype)

    # context c[b, t, d] = sum_s align[b, t, s] * m[b, s, d]
    c = lax.dot_general(
        align.astype(m.dtype), m,
        dimension_numbers=(((2,), (1,)), ((0,), (0,))),
        preferred_element_type=jnp.float32)               # (bblk, T, D) f32

    # h = tanh([c, q] @ W_out^T) with pre-split, pre-transposed weights.
    q2 = q.reshape(bblk * t, d)
    c2 = c.reshape(bblk * t, d).astype(m.dtype)
    pre = (jnp.dot(c2, wc_ref[...], preferred_element_type=jnp.float32)
           + jnp.dot(q2, wq_ref[...], preferred_element_type=jnp.float32))
    h = jnp.tanh(pre)                                     # (bblk*T, D) f32

    # Fold concat-over-banks + final proj into a per-bank projected sum.
    contrib = jnp.dot(h.astype(m.dtype), wp_ref[...],
                      preferred_element_type=jnp.float32)  # (bblk*T, Dout) f32

    @pl.when(n == 0)
    def _():
        acc_ref[...] = jnp.zeros_like(acc_ref)

    acc_ref[...] += contrib

    @pl.when(n == n_last)
    def _():
        dout = acc_ref.shape[-1]
        attn = acc_ref[...] + bias_ref[...]               # (bblk*T, Dout)
        attn_ref[...] = attn.reshape(bblk, t, dout).astype(attn_ref.dtype)


def _vmem_limit_bytes():
    """Scoped-VMEM budget derived from the actual chip (fallback: 48 MiB cap)."""
    try:
        cap = int(pltpu.get_tpu_info().vmem_capacity_bytes)
    except Exception:
        cap = 64 * 1024 * 1024
    # ~96 MiB on v5e/v6e (128 MiB physical), ~48 MiB on v7x (64 MiB physical).
    return max(32 * 1024 * 1024, min(cap * 3 // 4, 100 * 1024 * 1024))


def _auto_batch_block(batch, per_batch_bytes, fixed_bytes, budget,
                      prefer_multiple_tiles=True):
    divisors = [d for d in range(1, batch + 1) if batch % d == 0]
    fits = [d for d in divisors if fixed_bytes + d * per_batch_bytes <= budget]
    if not fits:
        fits = [1]
    best = max(fits)
    if prefer_multiple_tiles and best == batch and batch > 1:
        # Leave >= 2 batch tiles so both v7x TensorCores get parallel grid work.
        split = [d for d in fits if d <= batch // 2]
        if split:
            best = max(split)
    return best


def multibank_concat_global_attention(inp, banks, w_outs, w_proj, b_proj, *,
                                      batch_block=None, compute_dtype=None,
                                      prefer_multiple_tiles=True):
    """inp: [B, T, D]; banks: [N, B, S, D]; w_outs: [N, D, 2D] (per-bank linear_out,
    nn.Linear convention); w_proj: [Dout, N*D]; b_proj: [Dout].

    compute_dtype=jnp.bfloat16 streams q / banks / weights in bf16 (f32 accumulation).
    Returns (final_attn_h [T, B, Dout], final_align_v [T, B, N*S]).
    """
    B, T, D = inp.shape
    N, Bb, S, Dd = banks.shape
    assert Bb == B and Dd == D
    assert w_outs.shape == (N, D, 2 * D)
    Dout = w_proj.shape[0]
    assert w_proj.shape == (Dout, N * D)
    assert b_proj.shape == (Dout,)
    # NOTE: for production shapes keep T a multiple of 8 and S / D / Dout multiples of
    # 128 so reshapes are free relayouts and output stores are lane-dense.

    cdt = jnp.dtype(compute_dtype) if compute_dtype is not None else jnp.dtype(inp.dtype)

    # One-time weight reshaping / transposition outside the kernel ([in, out] layout).
    wcT = jnp.transpose(w_outs[:, :, :D], (0, 2, 1)).astype(cdt)             # (N, D, D)
    wqT = jnp.transpose(w_outs[:, :, D:], (0, 2, 1)).astype(cdt)             # (N, D, D)
    wpT = jnp.transpose(w_proj.reshape(Dout, N, D), (1, 2, 0)).astype(cdt)   # (N, D, Dout)
    bias = b_proj.reshape(1, Dout).astype(jnp.float32)

    q = inp.astype(cdt)
    mb = banks.astype(cdt)

    # ---- VMEM-aware batch tiling --------------------------------------------------
    bc = cdt.itemsize
    vmem_limit = _vmem_limit_bytes()
    per_batch = (2 * T * D * bc            # q tile (double buffered)
                 + 2 * S * D * bc          # bank tile
                 + 2 * T * Dout * 4        # attn out tile
                 + 2 * T * S * 4           # align out tile
                 + T * Dout * 4            # f32 scratch accumulator
                 + T * (3 * S + 3 * D + 2 * Dout) * 4)   # live f32 intermediates
    fixed = 2 * (2 * D * D + D * Dout) * bc + 2 * Dout * 4 + (2 << 20)
    if batch_block is None:
        bblk = _auto_batch_block(B, per_batch, fixed, int(0.9 * vmem_limit),
                                 prefer_multiple_tiles)
    else:
        bblk = max(1, min(batch_block, B))
        while B % bblk != 0:
            bblk -= 1
    nb = B // bblk

    cost = pl.CostEstimate(
        flops=int(2 * N * B * T * (2 * S * D + 2 * D * D + D * Dout)),
        transcendentals=int(N * B * T * (S + D)),
        bytes_accessed=int(q.size * bc + mb.size * bc
                           + (wcT.size + wqT.size + wpT.size) * bc
                           + B * T * Dout * 4 + N * B * T * S * 4))

    attn, align = pl.pallas_call(
        _attn_bank_kernel,
        out_shape=(
            jax.ShapeDtypeStruct((B, T, Dout), jnp.float32),
            jax.ShapeDtypeStruct((N, B, T, S), jnp.float32),
        ),
        grid_spec=pltpu.PrefetchScalarGridSpec(
            num_scalar_prefetch=0,
            grid=(nb, N),
            in_specs=[
                pl.BlockSpec((bblk, T, D), lambda i, n: (i, 0, 0)),           # q (resident over banks)
                pl.BlockSpec((None, bblk, S, D), lambda i, n: (n, i, 0, 0)),  # one bank tile per step
                pl.BlockSpec((None, D, D), lambda i, n: (n, 0, 0)),           # wcT[n]
                pl.BlockSpec((None, D, D), lambda i, n: (n, 0, 0)),           # wqT[n]
                pl.BlockSpec((None, D, Dout), lambda i, n: (n, 0, 0)),        # wpT[n]
                pl.BlockSpec((1, Dout), lambda i, n: (0, 0)),                 # bias
            ],
            out_specs=[
                pl.BlockSpec((bblk, T, Dout), lambda i, n: (i, 0, 0)),        # attn (acc over banks)
                pl.BlockSpec((None, bblk, T, S), lambda i, n: (n, i, 0, 0)),  # this bank's align
            ],
            scratch_shapes=[pltpu.VMEM((bblk * T, Dout), jnp.float32)],
        ),
        compiler_params=pltpu.CompilerParams(
            dimension_semantics=("parallel", "arbitrary"),
            vmem_limit_bytes=int(vmem_limit),
        ),
        cost_estimate=cost,
    )(q, mb, wcT, wqT, wpT, bias)

    # Module contract: tgt_len-major outputs (single XLA transpose each).
    final_attn_h = jnp.transpose(attn, (1, 0, 2))                              # (T, B, Dout)
    final_align_v = jnp.transpose(align, (2, 1, 0, 3)).reshape(T, B, N * S)    # (T, B, N*S)
    return final_attn_h, final_align_v


def _reference(inp, banks, w_outs, w_proj, b_proj):
    """Pure-JAX mirror of MultibankConcatGlobalAttention.forward (dot attention)."""
    N = banks.shape[0]
    hs, als = [], []
    for n in range(N):
        m = banks[n]                                            # [B, S, D]
        scores = jnp.einsum('btd,bsd->bts', inp, m)             # [B, T, S]
        align = jax.nn.softmax(scores, axis=-1)
        c = jnp.einsum('bts,bsd->btd', align, m)                # [B, T, D]
        concat = jnp.concatenate([c, inp], axis=-1)             # [B, T, 2D]
        attn_h = jnp.tanh(concat @ w_outs[n].T)                 # [B, T, D]
        hs.append(jnp.transpose(attn_h, (1, 0, 2)))             # [T, B, D]
        als.append(jnp.transpose(align, (1, 0, 2)))             # [T, B, S]
    cat_h = jnp.concatenate(hs, axis=-1)                        # [T, B, N*D]
    final_attn_h = cat_h @ w_proj.T + b_proj                    # [T, B, Dout]
    final_align_v = jnp.concatenate(als, axis=-1)               # [T, B, N*S]
    return final_attn_h, final_align_v


if __name__ == "__main__":
    B, T, S, D = 2, 8, 16, 32
    N_BANKS = 2
    DOUT = 32

    key = jax.random.PRNGKey(0)
    k1, k2, k3, k4, k5 = jax.random.split(key, 5)
    inp = jax.random.normal(k1, (B, T, D), dtype=jnp.float32)
    banks = jax.random.normal(k2, (N_BANKS, B, S, D), dtype=jnp.float32)
    # Per-bank linear_out: nn.Linear(2*dim, dim, bias=False) -> weight [dim, 2*dim]
    w_outs = (jax.random.normal(k3, (N_BANKS, D, 2 * D), dtype=jnp.float32)
              / jnp.sqrt(2.0 * D))
    # Final proj: nn.Linear(N*dim, dim) -> weight [dim, N*dim], bias [dim]
    w_proj = (jax.random.normal(k4, (DOUT, N_BANKS * D), dtype=jnp.float32)
              / jnp.sqrt(float(N_BANKS * D)))
    b_proj = 0.1 * jax.random.normal(k5, (DOUT,), dtype=jnp.float32)

    ref_attn, ref_align = _reference(inp, banks, w_outs, w_proj, b_proj)

    # f32 path: strict parity check (tolerance covers pl.reciprocal(approx=True)).
    attn_h, align_v = multibank_concat_global_attention(inp, banks, w_outs,
                                                        w_proj, b_proj)
    jax.block_until_ready((attn_h, align_v))
    assert attn_h.shape == (T, B, DOUT)
    assert align_v.shape == (T, B, N_BANKS * S)
    assert jnp.allclose(attn_h, ref_attn, atol=5e-3, rtol=5e-3)
    assert jnp.allclose(align_v, ref_align, atol=5e-3, rtol=5e-3)

    # bf16-streaming path: banks/q/weights in bf16, f32 softmax stats + accumulation.
    attn_bf, align_bf = multibank_concat_global_attention(
        inp, banks, w_outs, w_proj, b_proj, compute_dtype=jnp.bfloat16)
    jax.block_until_ready((attn_bf, align_bf))
    assert attn_bf.shape == ref_attn.shape and align_bf.shape == ref_align.shape
    assert bool(jnp.all(jnp.isfinite(attn_bf))) and bool(jnp.all(jnp.isfinite(align_bf)))
    assert float(jnp.mean(jnp.abs(attn_bf - ref_attn))) < 0.06
    assert float(jnp.mean(jnp.abs(align_bf - ref_align))) < 0.03

    print("KERNEL_OK")
</pallas_src>

<mosaic_0001>
module attributes {stable_mosaic.version = 11 : i64} {
  func.func @_attn_bank_kernel(%arg0: i32, %arg1: i32, %arg2: memref<1x8x32xf32, #tpu.memory_space<vmem>>, %arg3: memref<1x1x16x32xf32, #tpu.memory_space<vmem>>, %arg4: memref<1x32x32xf32, #tpu.memory_space<vmem>>, %arg5: memref<1x32x32xf32, #tpu.memory_space<vmem>>, %arg6: memref<1x32x32xf32, #tpu.memory_space<vmem>>, %arg7: memref<1x32xf32, #tpu.memory_space<vmem>>, %arg8: memref<1x8x32xf32, #tpu.memory_space<vmem>>, %arg9: memref<1x1x8x16xf32, #tpu.memory_space<vmem>>, %arg10: memref<8x32xf32, #tpu.memory_space<vmem>>) attributes {dimension_semantics = [#tpu.dimension_semantics<parallel>, #tpu.dimension_semantics<arbitrary>], iteration_bounds = array<i64: 2, 2>, scalar_prefetch = 0 : i64, scratch_operands = 1 : i64, tpu.core_type = #tpu.core_type<tc>, window_params = [{transform_indices = @transform_0, window_bounds = array<i64: 1, 8, 32>}, {transform_indices = @transform_1, window_bounds = array<i64: 1, 1, 16, 32>}, {transform_indices = @transform_2, window_bounds = array<i64: 1, 32, 32>}, {transform_indices = @transform_3, window_bounds = array<i64: 1, 32, 32>}, {transform_indices = @transform_4, window_bounds = array<i64: 1, 32, 32>}, {pipeline_mode = #tpu.pipeline_mode<synchronous>, transform_indices = @transform_5, window_bounds = array<i64: 1, 32>}, {transform_indices = @transform_6, window_bounds = array<i64: 1, 8, 32>}, {transform_indices = @transform_7, window_bounds = array<i64: 1, 1, 8, 16>}]} {
    %c0 = arith.constant 0 : index
    %c0_0 = arith.constant 0 : index
    %c0_1 = arith.constant 0 : index
    %0 = vector.load %arg2[%c0, %c0_0, %c0_1] : memref<1x8x32xf32, #tpu.memory_space<vmem>>, vector<1x8x32xf32>
    %c0_2 = arith.constant 0 : index
    %c0_3 = arith.constant 0 : index
    %c0_4 = arith.constant 0 : index
    %c0_5 = arith.constant 0 : index
    %1 = vector.load %arg3[%c0_2, %c0_3, %c0_4, %c0_5] : memref<1x1x16x32xf32, #tpu.memory_space<vmem>>, vector<1x1x16x32xf32>
    %2 = vector.shape_cast %1 : vector<1x1x16x32xf32> to vector<1x16x32xf32>
    %cst = arith.constant dense<0.000000e+00> : vector<1x8x16xf32>
    %3 = tpu.matmul %0, %2, %cst {dimension_numbers = #tpu.dot_dimension_numbers<[2], [2], [1], [1], [0, 0, 0, 1, 1, 1], [0], [0]>} : vector<1x8x32xf32>, vector<1x16x32xf32>, vector<1x8x16xf32> -> vector<1x8x16xf32>
    %cst_6 = arith.constant dense<0xFF800000> : vector<1x8xf32>
    %4 = vector.multi_reduction <maximumf>, %3, %cst_6 [2] : vector<1x8x16xf32> to vector<1x8xf32>
    %5 = vector.shape_cast %4 : vector<1x8xf32> to vector<1x8x1xf32>
    %6 = vector.broadcast %5 : vector<1x8x1xf32> to vector<1x8x16xf32>
    %7 = arith.subf %3, %6 : vector<1x8x16xf32>
    %8 = math.exp %7 : vector<1x8x16xf32>
    %cst_7 = arith.constant dense<0.000000e+00> : vector<1x8xf32>
    %9 = vector.multi_reduction <add>, %8, %cst_7 [2] : vector<1x8x16xf32> to vector<1x8xf32>
    %10 = vector.shape_cast %9 : vector<1x8xf32> to vector<1x8x1xf32>
    %11 = tpu.reciprocal %10 {approx = true} : vector<1x8x1xf32> -> vector<1x8x1xf32>
    %12 = vector.broadcast %11 : vector<1x8x1xf32> to vector<1x8x16xf32>
    %13 = arith.mulf %8, %12 : vector<1x8x16xf32>
    %c0_8 = arith.constant 0 : index
    %c0_9 = arith.constant 0 : index
    %c0_10 = arith.constant 0 : index
    %c0_11 = arith.constant 0 : index
    %14 = vector.load %arg9[%c0_8, %c0_9, %c0_10, %c0_11] : memref<1x1x8x16xf32, #tpu.memory_space<vmem>>, vector<1x1x8x16xf32>
    %15 = vector.shape_cast %14 : vector<1x1x8x16xf32> to vector<1x8x16xf32>
    %16 = vector.shape_cast %13 : vector<1x8x16xf32> to vector<1x1x8x16xf32>
    tpu.vector_store %arg9[%c0_8, %c0_9, %c0_10, %c0_11], %16 {strides = array<i32>} : memref<1x1x8x16xf32, #tpu.memory_space<vmem>>, vector<1x1x8x16xf32>,
    %cst_12 = arith.constant dense<0.000000e+00> : vector<1x8x32xf32>
    %17 = tpu.matmul %13, %2, %cst_12 {dimension_numbers = #tpu.dot_dimension_numbers<[2], [1], [1], [2], [0, 0, 0, 1, 1, 2], [0], [0]>} : vector<1x8x16xf32>, vector<1x16x32xf32>, vector<1x8x32xf32> -> vector<1x8x32xf32>
    %18 = vector.shape_cast %0 : vector<1x8x32xf32> to vector<8x32xf32>
    %19 = vector.shape_cast %17 : vector<1x8x32xf32> to vector<8x32xf32>
    %c0_13 = arith.constant 0 : index
    %c0_14 = arith.constant 0 : index
    %c0_15 = arith.constant 0 : index
    %20 = vector.load %arg4[%c0_13, %c0_14, %c0_15] : memref<1x32x32xf32, #tpu.memory_space<vmem>>, vector<1x32x32xf32>
    %21 = vector.shape_cast %20 : vector<1x32x32xf32> to vector<32x32xf32>
    %cst_16 = arith.constant dense<0.000000e+00> : vector<8x32xf32>
    %22 = tpu.matmul %19, %21, %cst_16 {dimension_numbers = #tpu.dot_dimension_numbers<[1], [0], [0], [1], [0, 0, 1, 1], [], []>} : vector<8x32xf32>, vector<32x32xf32>, vector<8x32xf32> -> vector<8x32xf32>
    %c0_17 = arith.constant 0 : index
    %c0_18 = arith.constant 0 : index
    %c0_19 = arith.constant 0 : index
    %23 = vector.load %arg5[%c0_17, %c0_18, %c0_19] : memref<1x32x32xf32, #tpu.memory_space<vmem>>, vector<1x32x32xf32>
    %24 = vector.shape_cast %23 : vector<1x32x32xf32> to vector<32x32xf32>
    %cst_20 = arith.constant dense<0.000000e+00> : vector<8x32xf32>
    %25 = tpu.matmul %18, %24, %cst_20 {dimension_numbers = #tpu.dot_dimension_numbers<[1], [0], [0], [1], [0, 0, 1, 1], [], []>} : vector<8x32xf32>, vector<32x32xf32>, vector<8x32xf32> -> vector<8x32xf32>
    %26 = arith.addf %22, %25 : vector<8x32xf32>
    %27 = math.tanh %26 : vector<8x32xf32>
    %c0_21 = arith.constant 0 : index
    %c0_22 = arith.constant 0 : index
    %c0_23 = arith.constant 0 : index
    %28 = vector.load %arg6[%c0_21, %c0_22, %c0_23] : memref<1x32x32xf32, #tpu.memory_space<vmem>>, vector<1x32x32xf32>
    %29 = vector.shape_cast %28 : vector<1x32x32xf32> to vector<32x32xf32>
    %cst_24 = arith.constant dense<0.000000e+00> : vector<8x32xf32>
    %30 = tpu.matmul %27, %29, %cst_24 {dimension_numbers = #tpu.dot_dimension_numbers<[1], [0], [0], [1], [0, 0, 1, 1], [], []>} : vector<8x32xf32>, vector<32x32xf32>, vector<8x32xf32> -> vector<8x32xf32>
    %c0_i32 = arith.constant 0 : i32
    %31 = arith.cmpi eq, %arg1, %c0_i32 : i32
    %32 = arith.extui %31 : i1 to i32
    %c0_i32_25 = arith.constant 0 : i32
    %33 = arith.cmpi ne, %32, %c0_i32_25 : i32
    scf.if %33 {
      %cst_31 = arith.constant 0.000000e+00 : f32
      %40 = vector.broadcast %cst_31 : f32 to vector<8x32xf32>
      %c0_32 = arith.constant 0 : index
      %c0_33 = arith.constant 0 : index
      %41 = vector.load %arg10[%c0_32, %c0_33] : memref<8x32xf32, #tpu.memory_space<vmem>>, vector<8x32xf32>
      tpu.vector_store %arg10[%c0_32, %c0_33], %40 {strides = array<i32>} : memref<8x32xf32, #tpu.memory_space<vmem>>, vector<8x32xf32>,
    } else {
    }
    %c0_26 = arith.constant 0 : index
    %c0_27 = arith.constant 0 : index
    %34 = vector.load %arg10[%c0_26, %c0_27] : memref<8x32xf32, #tpu.memory_space<vmem>>, vector<8x32xf32>
    %35 = arith.addf %34, %30 : vector<8x32xf32>
    %c0_28 = arith.constant 0 : index
    %c0_29 = arith.constant 0 : index
    %36 = vector.load %arg10[%c0_28, %c0_29] : memref<8x32xf32, #tpu.memory_space<vmem>>, vector<8x32xf32>
    tpu.vector_store %arg10[%c0_28, %c0_29], %35 {strides = array<i32>} : memref<8x32xf32, #tpu.memory_space<vmem>>, vector<8x32xf32>,
    %c1_i32 = arith.constant 1 : i32
    %37 = arith.cmpi eq, %arg1, %c1_i32 : i32
    %38 = arith.extui %37 : i1 to i32
    %c0_i32_30 = arith.constant 0 : i32
    %39 = arith.cmpi ne, %38, %c0_i32_30 : i32
    scf.if %39 {
      %c0_31 = arith.constant 0 : index
      %c0_32 = arith.constant 0 : index
      %40 = vector.load %arg10[%c0_31, %c0_32] : memref<8x32xf32, #tpu.memory_space<vmem>>, vector<8x32xf32>
      %c0_33 = arith.constant 0 : index
      %c0_34 = arith.constant 0 : index
      %41 = vector.load %arg7[%c0_33, %c0_34] : memref<1x32xf32, #tpu.memory_space<vmem>>, vector<1x32xf32>
      %42 = vector.broadcast %41 : vector<1x32xf32> to vector<8x32xf32>
      %43 = arith.addf %40, %42 : vector<8x32xf32>
      %44 = vector.shape_cast %43 : vector<8x32xf32> to vector<1x8x32xf32>
      %c0_35 = arith.constant 0 : index
      %c0_36 = arith.constant 0 : index
      %c0_37 = arith.constant 0 : index
      %45 = vector.load %arg8[%c0_35, %c0_36, %c0_37] : memref<1x8x32xf32, #tpu.memory_space<vmem>>, vector<1x8x32xf32>
      tpu.vector_store %arg8[%c0_35, %c0_36, %c0_37], %44 {strides = array<i32>} : memref<1x8x32xf32, #tpu.memory_space<vmem>>, vector<1x8x32xf32>,
    } else {
    }
    return
  }
  func.func @transform_0(%arg0: i32, %arg1: i32) -> (i32, i32, i32) {
    %c0_i32 = arith.constant 0 : i32
    %c0_i32_0 = arith.constant 0 : i32
    %c0_i32_1 = arith.constant 0 : i32
    return %arg0, %c0_i32, %c0_i32_0 : i32, i32, i32
  }
  func.func @transform_1(%arg0: i32, %arg1: i32) -> (i32, i32, i32, i32) {
    %c0_i32 = arith.constant 0 : i32
    %c0_i32_0 = arith.constant 0 : i32
    %c0_i32_1 = arith.constant 0 : i32
    return %arg1, %arg0, %c0_i32, %c0_i32_0 : i32, i32, i32, i32
  }
  func.func @transform_2(%arg0: i32, %arg1: i32) -> (i32, i32, i32) {
    %c0_i32 = arith.constant 0 : i32
    %c0_i32_0 = arith.constant 0 : i32
    %c0_i32_1 = arith.constant 0 : i32
    return %arg1, %c0_i32, %c0_i32_0 : i32, i32, i32
  }
  func.func @transform_3(%arg0: i32, %arg1: i32) -> (i32, i32, i32) {
    %c0_i32 = arith.constant 0 : i32
    %c0_i32_0 = arith.constant 0 : i32
    %c0_i32_1 = arith.constant 0 : i32
    return %arg1, %c0_i32, %c0_i32_0 : i32, i32, i32
  }
  func.func @transform_4(%arg0: i32, %arg1: i32) -> (i32, i32, i32) {
    %c0_i32 = arith.constant 0 : i32
    %c0_i32_0 = arith.constant 0 : i32
    %c0_i32_1 = arith.constant 0 : i32
    return %arg1, %c0_i32, %c0_i32_0 : i32, i32, i32
  }
  func.func @transform_5(%arg0: i32, %arg1: i32) -> (i32, i32) {
    %c0_i32 = arith.constant 0 : i32
    %c0_i32_0 = arith.constant 0 : i32
    %c0_i32_1 = arith.constant 0 : i32
    return %c0_i32, %c0_i32_0 : i32, i32
  }
  func.func @transform_6(%arg0: i32, %arg1: i32) -> (i32, i32, i32) {
    %c0_i32 = arith.constant 0 : i32
    %c0_i32_0 = arith.constant 0 : i32
    %c0_i32_1 = arith.constant 0 : i32
    return %arg0, %c0_i32, %c0_i32_0 : i32, i32, i32
  }
  func.func @transform_7(%arg0: i32, %arg1: i32) -> (i32, i32, i32, i32) {
    %c0_i32 = arith.constant 0 : i32
    %c0_i32_0 = arith.constant 0 : i32
    %c0_i32_1 = arith.constant 0 : i32
    return %arg1, %arg0, %c0_i32, %c0_i32_0 : i32, i32, i32, i32
  }
}

</mosaic_0001>

<bundles_post_ra>
// kernel: tpu_custom_call.1
= control target key start
LH: loop header
LB: loop body
LE: loop exit
PB: predicated region body
PF: predicated region fallthrough
CT: control target
= control target key end

     0   :  { %s2431_s0 = inlined_call_operand.hbm [shape: f32[2,8,32], index: 0, kind: input, shape index: {}]   ;;  %s2432_s1 = inlined_call_operand.hbm [shape: f32[2,2,16,32], index: 1, kind: input, shape index: {}]   ;;  %s2433_s2 = inlined_call_operand.hbm [shape: f32[2,32,32], index: 2, kind: input, shape index: {}]   ;;  %s2434_s3 = inlined_call_operand.hbm [shape: f32[2,32,32], index: 3, kind: input, shape index: {}]   ;;  %s2435_s4 = inlined_call_operand.hbm [shape: f32[2,32,32], index: 4, kind: input, shape index: {}]   ;;  %s2436_s5 = inlined_call_operand.vmem [shape: f32[1,32], index: 5, kind: input, shape index: {}]   ;;  %s2437_s6 = inlined_call_operand.hbm [shape: f32[2,8,32], index: 6, kind: output, shape index: {0}]   ;;  %s2438_s7 = inlined_call_operand.hbm [shape: f32[2,2,8,16], index: 7, kind: output, shape index: {1}]  }
   0x1   :  { %2481 = sst [smem:[#allocation41_spill]] %s2431_s0 }
   0x2   :  { %2482 = sst [smem:[#allocation42_spill]] %s2432_s1 }
   0x3   :  { %2483 = sst [smem:[#allocation43_spill]] %s2433_s2 }
   0x4   :  { %2484 = sst [smem:[#allocation44_spill]] %s2434_s3 }
   0x5   :  { %2485 = sst [smem:[#allocation45_spill]] %s2435_s4 }
   0x6   :  { %2486 = sst [smem:[#allocation46_spill]] %s2436_s5 }
   0x7   :  { %2487 = sst [smem:[#allocation47_spill]] %s2437_s6 }
   0x8   :  { %2488 = sst [smem:[#allocation48_spill]] %s2438_s7 }
   0x9   :  { %13 = vsyncpa [#allocation4], 0 }
   0xa   :  { %15 = vsyncpa [#allocation4 + $0x1], 0 }
   0xb   :  { %16 = vsyncpa [#allocation7], 0 }
   0xc   :  { %18 = vsyncpa [#allocation7 + $0x1], 0 }
   0xd   :  { %19 = vsyncpa [#allocation10], 0 }
   0xe   :  { %21 = vsyncpa [#allocation10 + $0x1], 0 }
   0xf   :  { %22 = vsyncpa [#allocation5], 0 }
  0x10   :  { %24 = vsyncpa [#allocation5 + $0x1], 0 }
  0x11   :  { %25 = vsyncpa [#allocation14], 0 }
  0x12   :  { %27 = vsyncpa [#allocation14 + $0x1], 0  ;;  %s1835_s24 = smov 0   ;;  %s1837_s25 = smov 0  }
  0x13   :  { %s1839_s26 = smov 0   ;;  %s1841_s27 = smov 0  }
  0x14   :  { %s1843_s28 = smov 0   ;;  %s1845_s29 = smov 0  }
  0x15   :  { %s1847_s30 = smov 0   ;;  %s1849_s8 = smov 0  }
  0x16   :  { %s1851_s9 = smov 0   ;;  %s1853_s10 = smov 0  }
  0x17   :  { %s1855_s11 = smov 0   ;;  %s1857_s12 = smov 0  }
  0x18   :  { %s1859_s13 = smov 0   ;;  %s1861_s14 = smov 0  }
  0x19 LB: > { %2489 = sst [smem:[#allocation21_spill]] %s1736_s26  ;;  %s42_s15 = sadd.s32 1, %s1772_s12  ;;  %s1780_s14 = sphi %s1861_s14, %s33_s14   ;;  %s1776_s13 = sphi %s1859_s13, %s2576_s13   ;;  %s1772_s12 = sphi %s1857_s12, %s2584_s12   ;;  %s1768_s11 = sphi %s1855_s11, %s2583_s11   ;;  %s1764_s10 = sphi %s1853_s10, %s2573_s10   ;;  %s1760_s9 = sphi %s1851_s9, %s2572_s9   ;;  %s1756_s8 = sphi %s1849_s8, %s2582_s8   ;;  %s1752_s30 = sphi %s1847_s30, %s2581_s30   ;;  %s1748_s29 = sphi %s1845_s29, %s2570_s29   ;;  %s1744_s28 = sphi %s1843_s28, %s2580_s28   ;;  %s1740_s27 = sphi %s1841_s27, %s2579_s27   ;;  %s1736_s26 = sphi %s1839_s26, %s2568_s26   ;;  %s1732_s25 = sphi %s1837_s25, %s2578_s25   ;;  %s1728_s24 = sphi %s1835_s24, %s2577_s24  }
  0x1a   : > { %2490 = sst [smem:[#allocation22_spill]] %s1740_s27  ;;  %s45_s16 = sadd.s32 1, %s1776_s13 }
  0x1b   : > { %2491 = sst [smem:[#allocation23_spill]] %s1748_s29  ;;  %p43_p0 = scmp.ge.s32.totalorder %s42_s15, 2 }
  0x1c   : > { %2492 = sst [smem:[#allocation24_spill]] %s1752_s30  ;;  %p2449_p1 = scmp.eq.s32.totalorder %s1780_s14, 0 }
  0x1d   : > { %2493 = sst [smem:[#allocation25_spill]] %s1760_s9  ;;  %s80_s17 = sadd.s32 1, %s1748_s29 }
  0x1e   : > { %2494 = sst [smem:[#allocation26_spill]] %s1764_s10  ;;  %p2447_p2 = scmp.ne.s32.totalorder %s1748_s29, %s1744_s28 }
  0x1f   : > { %2495 = sst [smem:[#allocation27_spill]] %s1768_s11  ;;  %s2586_s15 = smov (%p43_p0, %s42_s15), 0 }
  0x20   : > { %2496 = sst [smem:[#allocation28_spill]] %s1772_s12  ;;  %s2588_s16 = smov (!%p43_p0, %s45_s16), %s1776_s13 }
  0x21   : > { %2497 = sst [smem:[#allocation29_spill]] %s1776_s13  ;;  %s1916_s18 = ssub.s32 %s1772_s12, %s2586_s15 }
  0x22   : > { %2498 = sst [smem:[#allocation30_spill]] %s1780_s14  ;;  %p1923_p3 = por %p2447_p2, %p2449_p1 }
  0x23   : > { %2499 = sst [smem:[#allocation31_spill]] %s2586_s15  ;;  %p47_p4 = scmp.ge.s32.totalorder %s2588_s16, 2 }
  0x24   : > { %p104_p6 = scmp.eq.s32.totalorder %s1916_s18, 0  ;;  %p2448_p7 = scmp.lt.s32.totalorder %s1780_s14, 4 }
  0x25   : > { %s2590_s16 = smov (%p47_p4, %s2588_s16), 0  ;;  %s293_s23 = sand.u32 1, %s1748_s29  }
  0x26   : > { %2501 = sst [smem:[#allocation32_spill]] %s2590_s16  ;;  %s1936_s21 = ssub.s32 %s1776_s13, %s2590_s16 }
  0x27   : > { %s77_s22 = sor.u32 %s1916_s18, %s1936_s21  ;;  %s1141_s15 = sshll.u32 %s293_s23, 4 }
  0x28   : > { %p78_p8 = scmp.eq.s32.totalorder %s77_s22, 0  ;;  %s1142_s7 = sshll.u32 %s1776_s13, 1 }
  0x29   : > { %s1143_s11 = sshll.u32 %s1772_s12, 2  ;;  %s295_s5 = scalar_lea.vmem [#allocation6], %s1141_s15 }
  0x2a   : > { %s1943_s6 = scalar_select %p78_p8, %s1748_s29, %s80_s17  }
  0x2b   : > { %s304_s10 = sshll.u32 %s295_s5, 4  ;;  %s301_s4 = sadd.s32 %s1143_s11, %s1142_s7  ;;  %s1946_s10 = int_to_ptr.vmem [resolvable:$true] %s304_s10 }
  0x2c   : > { %2502 = sst [smem:[#allocation33_spill]] %s1943_s6  ;;  %s1144_s2 = sshll.u32 %s301_s4, 7 }
  0x2d   : > { %p1952_p9 = pnand %p2448_p7, %p1923_p3  ;;  %s2504_s1 = sld [smem:[#allocation42_spill]] }
  0x2e   : > { %s2505_s22 = sand.u32 1, %s1780_s14  }
  0x2f   : > { %s1963_s5 = scalar_lea.sflag [#allocation7], %s2505_s22  ;;  %p1442_p11 = pneg %p1952_p9 }
  0x33   : > { %s1959_s17 = scalar_lea.hbm %s2504_s1, %s1144_s2  ;;  %s1445_s2 = scalar_lea.hbm %s2504_s1, 1024 }
  0x34   : > { %s1440_s4 = scalar_lea.hbm %s1959_s17, 256  ;;  %p1446_p0 = scmp.lt.u32.totalorder %s1959_s17, %s2504_s1 }
  0x35   : > { %p1441_p10 = scmp.ne.s32.totalorder %s1959_s17, %s1440_s4  ;;  %p1447_p3 = scmp.lt.u32.totalorder %s1445_s2, %s1440_s4 }
  0x36   : > { %p1449_p8 = scmp.lt.u32.totalorder %s1440_s4, %s1959_s17 }
  0x37   : > { %p1443_p12 = pnand %p1442_p11, %p1441_p10  ;;  %p1448_p4 = por %p1447_p3, %p1446_p0 }
  0x39   : > { %p1444_p13 = pneg %p1443_p12  ;;  %p1450_p2 = por %p1449_p8, %p1448_p4 }
  0x3b   : > { %p1451_p5 = pnand %p1450_p2, %p1444_p13 }
  0x3d   : > { %1454 = shalt.err (!%p1451_p5)
}
  0x3e   : > { %s1455_s16 = scalar_lea.vmem %s1946_s10, 256  ;;  %s1782_s19 = smov [#allocation6]  }
  0x3f   : > { %p1456_p10 = scmp.ne.s32.totalorder %s1946_s10, %s1455_s16  ;;  %s1460_s23 = sshll.u32 %s1782_s19, 4  ;;  %s1461_s23 = int_to_ptr.vmem [resolvable:$false] %s1460_s23 }
  0x40   : > { %s1462_s22 = scalar_lea.vmem %s1461_s23, 512  ;;  %p1463_p1 = scmp.lt.s32.totalorder %s1946_s10, %s1461_s23 }
  0x41   : > { %p1458_p12 = pnand %p1456_p10, %p1442_p11  ;;  %p1464_p0 = scmp.lt.s32.totalorder %s1462_s22, %s1455_s16 }
  0x43   : > { %p1459_p7 = pneg %p1458_p12  ;;  %p1465_p3 = por %p1464_p0, %p1463_p1 }
  0x45   : > { %p1466_p4 = pnand %p1465_p3, %p1459_p7 }
  0x47   : > { %1469 = shalt.err (!%p1466_p4)
}
  0x48   : > { %s2450_s4 = smov 128   ;;  %s2452_s0 = smov 8  }
  0x49   : > { %1297 = dma.hbm_to_vmem [thread:$0]  (!%p1952_p9), %s1959_s17, 256, %s1946_s10, %s1963_s5, %s2450_s4, %s2450_s4, %s2452_s0  }
  0x4a   : > { %p1154_p1 = scmp.ge.s32.totalorder %s1780_s14, 1  ;;  %p375_p2 = scmp.lt.s32.totalorder %s1780_s14, 5 }
  0x4b   : > { %s106_s2 = sadd.s32 1, %s1736_s26  ;;  %p113_p7 = scmp.ne.s32.totalorder %s1736_s26, %s1732_s25 }
  0x4c   : > { %p1996_p5 = pnand %p1154_p1, %p375_p2  ;;  %s316_s15 = sand.u32 1, %s1736_s26  }
  0x4d   : > { %s2004_s11 = scalar_select %p104_p6, %s1736_s26, %s106_s2  }
  0x4e   : > { %s2506_s7 = scalar_select %p1996_p5, 1, 0 }
  0x4f   : > { %2507 = sst [smem:[#allocation34_spill]] %s2004_s11  ;;  %s2012_s16 = sshll.u32 %s1772_s12, 9 }
  0x50   : > { %p2508_p13 = scmp.eq.s32.totalorder %s1780_s14, 0  ;;  %s2016_s10 = sshll.u32 %s316_s15, 5 }
  0x51   : > { %p2509_p9 = scmp.lt.s32.totalorder %s1780_s14, 4  ;;  %s2511_s3 = sld [smem:[#allocation44_spill]] }
  0x52   : > { %p115_p8 = por %p113_p7, %p2508_p13  ;;  %s339_s23 = scalar_lea.vmem [#allocation9], %s2016_s10 }
  0x53   : > { %s346_s22 = sshll.u32 %s339_s23, 4  ;;  %s2512_s2 = sand.u32 1, %s1780_s14   ;;  %s2031_s22 = int_to_ptr.vmem [resolvable:$true] %s346_s22 }
  0x54   : > { %p2020_p10 = pnand %p2509_p9, %p115_p8  ;;  %s2035_s15 = scalar_lea.sflag [#allocation10], %s2512_s2 }
  0x56   : > { %s2510_s20 = scalar_select %p2020_p10, 1, 0 }
  0x57   : > { %s2028_s19 = scalar_lea.hbm %s2511_s3, %s2012_s16  ;;  %p2041_p12 = pneg %p2020_p10 }
  0x58   : > { %s1470_s4 = scalar_lea.hbm %s2028_s19, 512  ;;  %s1475_s23 = scalar_lea.hbm %s2511_s3, 1024 }
  0x59   : > { %p1471_p6 = scmp.ne.s32.totalorder %s2028_s19, %s1470_s4  ;;  %p1476_p4 = scmp.lt.u32.totalorder %s2028_s19, %s2511_s3 }
  0x5a   : > { %s2513_s0 = scalar_select %p2041_p12, 1, 0 }
  0x5b   : > { %p1473_p0 = pnand %p2041_p12, %p1471_p6  ;;  %p1477_p1 = scmp.lt.u32.totalorder %s1475_s23, %s1470_s4 }
  0x5c   : > { %p1479_p7 = scmp.lt.u32.totalorder %s1470_s4, %s2028_s19 }
  0x5d   : > { %p1474_p3 = pneg %p1473_p0  ;;  %p1478_p2 = por %p1477_p1, %p1476_p4 }
  0x5f   : > { %p1480_p13 = por %p1479_p7, %p1478_p2 }
  0x61   : > { %p1481_p8 = pnand %p1480_p13, %p1474_p3 }
  0x63   : > { %1484 = shalt.err (!%p1481_p8)
}
  0x64   : > { %s1485_s2 = scalar_lea.vmem %s2031_s22, 512  ;;  %s1785_s17 = smov [#allocation9]  }
  0x65   : > { %p1486_p9 = scmp.ne.s32.totalorder %s2031_s22, %s1485_s2  ;;  %s1490_s18 = sshll.u32 %s1785_s17, 4  ;;  %s1491_s18 = int_to_ptr.vmem [resolvable:$false] %s1490_s18 }
  0x66   : > { %s1492_s1 = scalar_lea.vmem %s1491_s18, 1024  ;;  %p1493_p11 = scmp.lt.s32.totalorder %s2031_s22, %s1491_s18 }
  0x67   : > { %p1488_p6 = pnand %p1486_p9, %p2041_p12  ;;  %p1494_p5 = scmp.lt.s32.totalorder %s1492_s1, %s1485_s2 }
  0x69   : > { %p1489_p0 = pneg %p1488_p6  ;;  %p1495_p4 = por %p1494_p5, %p1493_p11 }
  0x6b   : > { %p1496_p1 = pnand %p1495_p4, %p1489_p0 }
  0x6d   : > { %1499 = shalt.err (!%p1496_p1)
}
  0x6e   : > { %s2514_s12 = smov 8   ;;  %s2515_s4 = smov 128  }
  0x6f   : > { %1303 = dma.hbm_to_vmem [thread:$0]  (!%p2020_p10), %s2028_s19, 512, %s2031_s22, %s2035_s15, %s2515_s4, %s2515_s4, %s2514_s12  }
  0x70   : > { %s2069_s23 = sadd.s32 4294967295, %s1780_s14   ;;  %s1136_s2 = sadd.s32 4294967294, %s1780_s14  }
  0x71   : > { %p50_p5 = scmp.eq.s32.totalorder %s1936_s21, 0  ;;  %s52_s17 = sadd.s32 1, %s1760_s9 }
  0x72   : > { %p59_p11 = scmp.ne.s32.totalorder %s1760_s9, %s1756_s8  ;;  %p2517_p3 = scmp.eq.s32.totalorder %s1780_s14, 0 }
  0x73   : > { %s2077_s18 = scalar_select %p50_p5, %s1760_s9, %s52_s17  }
  0x74   : > { %p2081_p2 = por %p2517_p3, %p59_p11  ;;  %p65_p7 = scmp.ne.s32.totalorder %s1756_s8, %s1752_s30 }
  0x75   : > { %2516 = sst [smem:[#allocation35_spill]] %s2077_s18  ;;  %p66_p13 = scmp.eq.s32.totalorder %s2069_s23, 0 }
  0x76   : > { %p216_p8 = scmp.eq.s32.totalorder %s2069_s23, 3  ;;  %p222_p9 = scmp.eq.s32.totalorder %s1136_s2, 3 }
  0x77   : > { %s273_s21 = sand.u32 1, %s1760_s9   ;;  %p2090_p6 = por %p66_p13, %p65_p7 }
  0x78   : > { %p2520_p0 = scmp.ne.s32.totalorder %s1744_s28, %s1740_s27  ;;  %p2522_p1 = scmp.ne.s32.totalorder %s1732_s25, %s1728_s24 }
  0x79   : > { %s2519_s19 = scalar_select %p2090_p6, 1, 0 }
  0x7a   : > { %p2097_p4 = por %p2520_p0, %p66_p13  ;;  %p2104_p5 = por %p2522_p1, %p66_p13 }
  0x7b   : > { %p2108_p3 = por %p216_p8, %p59_p11  ;;  %p2112_p10 = por %p222_p9, %p65_p7 }
  0x7c   : > { %s2521_s22 = scalar_select %p2097_p4, 1, 0 }
  0x7d   : > { %s2523_s17 = scalar_select %p2104_p5, 1, 0 }
  0x7e   : > { %s2525_s3 = scalar_select %p2108_p3, 1, 0 }
  0x7f   : > { %2524 = sst [smem:[#allocation36_spill]] %s2523_s17  ;;  %p2529_p12 = scmp.ne.s32.totalorder %s1748_s29, %s1744_s28 }
  0x80   : > { %2526 = sst [smem:[#allocation37_spill]] %s2525_s3  ;;  %p2126_p4 = por %p222_p9, %p2520_p0 }
  0x81   : > { %s2527_s2 = scalar_select %p2112_p10, 1, 0 }
  0x82   : > { %p2119_p6 = por %p216_p8, %p2529_p12  ;;  %s1139_s9 = sshll.u32 %s273_s21, 3 }
  0x83   : > { %2528 = sst [smem:[#allocation38_spill]] %s2527_s2  ;;  %s1140_s6 = sshll.u32 %s1776_s13, 7 }
  0x84   : > { %s2530_s18 = scalar_select %p2119_p6, 1, 0 }
  0x85   : > { %s2532_s24 = scalar_select %p2126_p4, 1, 0 }
  0x86   : > { %2531 = sst [smem:[#allocation39_spill]] %s2530_s18  ;;  %s2534_s30 = sld [smem:[#allocation41_spill]] }
  0x87   : > { %2533 = sst [smem:[#allocation40_spill]] %s2532_s24  ;;  %s277_s29 = scalar_lea.vmem [#allocation3], %s1139_s9 }
  0x88   : > { %s284_s2 = sshll.u32 %s277_s29, 4  ;;  %p2536_p12 = scmp.lt.s32.totalorder %s1780_s14, 4  ;;  %s2144_s2 = int_to_ptr.vmem [resolvable:$true] %s284_s2 }
  0x89   : > { %s274_s11 = scalar_lea.sflag [#allocation4], %s273_s21 }
  0x8a   : > { %p2140_p11 = pnand %p2536_p12, %p2081_p2 }
  0x8c   : > { %s2535_s17 = smov %s2534_s30  ;;  %s2134_s3 = scalar_lea.hbm %s2534_s30, %s1140_s6 }
  0x8d   : > { %s2538_s6 = sld [smem:[#allocation43_spill]]  ;;  %s1500_s24 = scalar_lea.hbm %s2134_s3, 128 }
  0x8e   : > { %p1501_p7 = scmp.ne.s32.totalorder %s2134_s3, %s1500_s24  ;;  %p1502_p13 = pneg %p2140_p11 }
  0x8f   : > { %s1505_s1 = scalar_lea.hbm %s2535_s17, 256  ;;  %p1506_p9 = scmp.lt.u32.totalorder %s2134_s3, %s2535_s17 }
  0x90   : > { %p1503_p2 = pnand %p1502_p13, %p1501_p7  ;;  %p1507_p1 = scmp.lt.u32.totalorder %s1505_s1, %s1500_s24 }
  0x91   : > { %p1509_p12 = scmp.lt.u32.totalorder %s1500_s24, %s2134_s3 }
  0x92   : > { %p1504_p8 = pneg %p1503_p2  ;;  %p1508_p0 = por %p1507_p1, %p1506_p9 }
  0x93   : > { %s2150_s30 = scalar_lea.hbm %s2538_s6, %s2012_s16 }
  0x94   : > { %p1510_p4 = por %p1509_p12, %p1508_p0 }
  0x96   : > { %p1511_p10 = pnand %p1510_p4, %p1504_p8 }
  0x98   : > { %1514 = shalt.err (!%p1511_p10)
}
  0x99   : > { %s1515_s13 = scalar_lea.vmem %s2144_s2, 128  ;;  %s1786_s21 = smov [#allocation3]  }
  0x9a   : > { %p1516_p7 = scmp.ne.s32.totalorder %s2144_s2, %s1515_s13  ;;  %s1520_s26 = sshll.u32 %s1786_s21, 4  ;;  %s1521_s26 = int_to_ptr.vmem [resolvable:$false] %s1520_s26 }
  0x9b   : > { %s1522_s14 = scalar_lea.vmem %s1521_s26, 256  ;;  %p1523_p3 = scmp.lt.s32.totalorder %s2144_s2, %s1521_s26 }
  0x9c   : > { %p1518_p2 = pnand %p1516_p7, %p1502_p13  ;;  %p1524_p9 = scmp.lt.s32.totalorder %s1522_s14, %s1515_s13 }
  0x9e   : > { %p1519_p6 = pneg %p1518_p2  ;;  %p1525_p1 = por %p1524_p9, %p1523_p3 }
  0xa0   : > { %p1526_p0 = pnand %p1525_p1, %p1519_p6 }
  0xa2   : > { %1529 = shalt.err (!%p1526_p0)
}
  0xa3   : > { %1294 = dma.hbm_to_vmem [thread:$0]  (!%p2140_p11), %s2134_s3, 128, %s2144_s2, %s274_s11  }
  0xa4   : > { %s318_s18 = scalar_lea.vmem [#allocation8], %s2016_s10  ;;  %s2539_s1 = sld [smem:[#allocation45_spill]] }
  0xa5   : > { %s325_s24 = sshll.u32 %s318_s18, 4  ;;  %s1530_s27 = scalar_lea.hbm %s2150_s30, 512  ;;  %s2178_s24 = int_to_ptr.vmem [resolvable:$true] %s325_s24 }
  0xa6   : > { %p1531_p10 = scmp.ne.s32.totalorder %s2150_s30, %s1530_s27  ;;  %p2540_p6 = scmp.ne.s32.totalorder %s2513_s0, 0 }
  0xa7   : > { %s1535_s14 = scalar_lea.hbm %s2538_s6, 1024  ;;  %p1536_p11 = scmp.lt.u32.totalorder %s2150_s30, %s2538_s6 }
  0xa8   : > { %p1533_p4 = pnand %p1531_p10, %p2540_p6  ;;  %p1537_p13 = scmp.lt.u32.totalorder %s1535_s14, %s1530_s27 }
  0xa9   : > { %p1539_p12 = scmp.lt.u32.totalorder %s1530_s27, %s2150_s30 }
  0xaa   : > { %s2184_s13 = scalar_lea.hbm %s2539_s1, %s2012_s16  ;;  %p1534_p3 = pneg %p1533_p4 }
  0xab   : > { %p1538_p8 = por %p1537_p13, %p1536_p11 }
  0xad   : > { %p1540_p7 = por %p1539_p12, %p1538_p8 }
  0xaf   : > { %p1541_p2 = pnand %p1540_p7, %p1534_p3 }
  0xb1   : > { %1544 = shalt.err (!%p1541_p2)
}
  0xb2   : > { %s1545_s16 = scalar_lea.vmem %s2178_s24, 512  ;;  %s1787_s2 = smov [#allocation8]  }
  0xb3   : > { %p1546_p9 = scmp.ne.s32.totalorder %s2178_s24, %s1545_s16  ;;  %s1550_s11 = sshll.u32 %s1787_s2, 4  ;;  %s1551_s11 = int_to_ptr.vmem [resolvable:$false] %s1550_s11 }
  0xb4   : > { %s1552_s17 = scalar_lea.vmem %s1551_s11, 1024  ;;  %p1553_p10 = scmp.lt.s32.totalorder %s2178_s24, %s1551_s11 }
  0xb5   : > { %p1548_p1 = pnand %p1546_p9, %p2540_p6  ;;  %p1554_p4 = scmp.lt.s32.totalorder %s1552_s17, %s1545_s16 }
  0xb7   : > { %p1549_p0 = pneg %p1548_p1  ;;  %p1555_p11 = por %p1554_p4, %p1553_p10 }
  0xb9   : > { %p1556_p13 = pnand %p1555_p11, %p1549_p0 }
  0xbb   : > { %1559 = shalt.err (!%p1556_p13)
}
  0xbc   : > { %p2541_p3 = scmp.ne.s32.totalorder %s2510_s20, 0  ;;  %s360_s18 = scalar_lea.vmem [#allocation11], %s2016_s10 }
  0xbd   : > { %s367_s29 = sshll.u32 %s360_s18, 4  ;;  %s1560_s9 = scalar_lea.hbm %s2184_s13, 512  ;;  %s2212_s29 = int_to_ptr.vmem [resolvable:$true] %s367_s29 }
  0xbe   : > { %1300 = dma.hbm_to_vmem [thread:$0]  (!%p2541_p3), %s2150_s30, 512, %s2178_s24, %s1963_s5, %s2515_s4, %s2515_s4, %s2514_s12  }
  0xbf   : > { %p1561_p8 = scmp.ne.s32.totalorder %s2184_s13, %s1560_s9  ;;  %s1565_s26 = scalar_lea.hbm %s2539_s1, 1024 }
  0xc0   : > { %p1566_p2 = scmp.lt.u32.totalorder %s2184_s13, %s2539_s1  ;;  %p1567_p9 = scmp.lt.u32.totalorder %s1565_s26, %s1560_s9 }
  0xc1   : > { %p1563_p12 = pnand %p1561_p8, %p2540_p6  ;;  %p1569_p0 = scmp.lt.u32.totalorder %s1560_s9, %s2184_s13 }
  0xc2   : > { %p1568_p1 = por %p1567_p9, %p1566_p2 }
  0xc3   : > { %p1564_p7 = pneg %p1563_p12 }
  0xc4   : > { %p1570_p10 = por %p1569_p0, %p1568_p1 }
  0xc6   : > { %p1571_p4 = pnand %p1570_p10, %p1564_p7 }
  0xc8   : > { %1574 = shalt.err (!%p1571_p4)
}
  0xc9   : > { %s1575_s5 = scalar_lea.vmem %s2212_s29, 512  ;;  %s1788_s10 = smov [#allocation11]  }
  0xca   : > { %p1576_p11 = scmp.ne.s32.totalorder %s2212_s29, %s1575_s5  ;;  %s1580_s30 = sshll.u32 %s1788_s10, 4  ;;  %s1581_s30 = int_to_ptr.vmem [resolvable:$false] %s1580_s30 }
  0xcb   : > { %s1582_s24 = scalar_lea.vmem %s1581_s30, 1024  ;;  %p1583_p12 = scmp.lt.s32.totalorder %s2212_s29, %s1581_s30 }
  0xcc   : > { %p1578_p13 = pnand %p1576_p11, %p2540_p6  ;;  %p1584_p5 = scmp.lt.s32.totalorder %s1582_s24, %s1575_s5 }
  0xce   : > { %p1579_p8 = pneg %p1578_p13  ;;  %p1585_p2 = por %p1584_p5, %p1583_p12 }
  0xd0   : > { %p1586_p9 = pnand %p1585_p2, %p1579_p8 }
  0xd2   : > { %1589 = shalt.err (!%p1586_p9)
}
  0xd3   : > { %1306 = dma.hbm_to_vmem [thread:$0]  (!%p2541_p3), %s2184_s13, 512, %s2212_s29, %s2035_s15, %s2515_s4, %s2515_s4, %s2514_s12  }
  0xd4   : > { %p2542_p6 = scmp.ne.s32.totalorder %s2506_s7, 0 }
  0xd5   : > { %s2242_s0 = sand.u32 (!%p2542_p6), 1, %s1756_s8   ;;  %p2543_p5 = scmp.ne.s32.totalorder (!%p2542_p6), %s2519_s19, 0 }
  0xd6   : > { %379 = sbr.rel (%p2542_p6) target bundleno = 1495 (0x5d7), region = 44  ;;  %s1155_s16 = sshll.u32 (!%p2542_p6), %s2242_s0, 3 }
  0xd7   : > { %s382_s2 = scalar_lea.sflag (!%p2542_p6), [#allocation4], %s2242_s0  ;;  %s2248_s20 = scalar_lea.vmem (!%p2542_p6), [#allocation3], %s1155_s16 }
  0xdd   : > { %1703 = dma.done.wait (%p2543_p5), %s382_s2, 128  }
  0xde   : > { %1705 = vsyncadd (%p2543_p5), %s382_s2, 4294967168  ;;  %s390_s7 = sand.u32 1, %s2069_s23   ;;  %s2256_s15 = sand.u32 1, %s1744_s28  }
  0xdf   : > { %s1156_s12 = sshll.u32 %s2256_s15, 4  ;;  %s391_s4 = scalar_lea.sflag [#allocation7], %s390_s7 }
  0xe0   : > { %s394_s13 = scalar_lea.vmem [#allocation6], %s1156_s12  ;;  %p2544_p3 = scmp.ne.s32.totalorder %s2521_s22, 0 }
  0xe2   : > { %1707 = dma.done.wait (%p2544_p3), %s391_s4, 256  }
  0xe3   : > { %1709 = vsyncadd (%p2544_p3), %s391_s4, 4294967040  ;;  %s2545_s11 = sld [smem:[#allocation36_spill]]  ;;  %s401_s17 = sand.u32 1, %s1732_s25  }
  0xe4   : > { %s2264_s19 = sshll.u32 %s401_s17, 5 }
  0xe5   : > { %s2267_s18 = scalar_lea.vmem [#allocation8], %s2264_s19 }
  0xe9   : > { %p2546_p7 = scmp.ne.s32.totalorder %s2545_s11, 0 }
  0xeb   : > { %1711 = dma.done.wait (%p2546_p7), %s391_s4, 512  }
  0xec   : > { %1713 = vsyncadd (%p2546_p7), %s391_s4, 4294966784  ;;  %s409_s23 = scalar_lea.sflag [#allocation10], %s390_s7  ;;  %s2274_s29 = scalar_lea.vmem [#allocation9], %s2264_s19 }
  0xed   : > { %1715 = dma.done.wait (%p2546_p7), %s409_s23, 1024  }
  0xee   : > { %1717 = vsyncadd (%p2546_p7), %s409_s23, 4294966272  ;;  %v1789_v0 = vmov 0.0|0.0   ;;  %vm1790_vm0 = vmmov 0   ;;  %v1791_v1 = vmov 0.0   ;;  %vm480_vm1 = vcmask 261120   ;;  %v478_v2 = vld [vmem:[%s394_s13] sm:$0xff] }
  0xef   : > { %1250 = vmatprep.subr.bf16.mxu0 %v1789_v0  ;;  %1207 = vmatprep.mubr.msk.f32.mxu0 %vm1790_vm0, %v1791_v1  ;;  %v479_v3 = vld [vmem:[%s394_s13 + $0x8] sm:$0xff]  ;;  %vm1252_vm2 = vmpackc.low %vm480_vm1, %vm480_vm1  ;;  %vm560_vm3 = vcmask 130048   ;;  %s1161_s22 = sshll.u32 %s2256_s15, 3  ;;  %v650_v15 = vld [vmem:[%s2274_s29] sm:$0xff]  ;;  %s421_s27 = scalar_lea.vmem [#allocation11], %s2264_s19 }
  0xf0   : > { %1254 = vmatprep.subr.bf16.mxu1 %v1789_v0  ;;  %1214 = vmatprep.mubr.msk.f32.mxu1 %vm1790_vm0, %v1791_v1  ;;  %v1251_v4 = vpack.c.bf16 %v479_v3, %v478_v2  ;;  %v477_v5 = vld [vmem:[%s2248_s20] sm:$0xff]  ;;  %v651_v16 = vld [vmem:[%s2274_s29 + $0x8] sm:$0xff]  ;;  %s2298_s9 = scalar_lea.vmem [#allocation13], %s1161_s22  ;;  %v646_v23 = vld [vmem:[%s2267_s18] sm:$0xff]  ;;  %s469_s21 = scalar_lea.vmem [#allocation12], %s1155_s16 }
  0xf1   : > { %v1258_v18 = vpack.c.bf16 %v651_v16, %v650_v15  ;;  %v652_v20 = vld [vmem:[%s2274_s29 + $0x10] sm:$0xff]  ;;  %v653_v21 = vld [vmem:[%s2274_s29 + $0x18] sm:$0xff]  ;;  %v647_v24 = vld [vmem:[%s2267_s18 + $0x8] sm:$0xff]  ;;  %s2547_s26 = sld [smem:[#allocation26_spill]] }
  0xf2   : > { %1253 = vmatpush3.bf16.xpose.msk.msra.mxu0 %vm1252_vm2, %v1251_v4  ;;  %1256 = vmatpush3.bf16.msra.mxu1 %v1251_v4  ;;  %v1261_v22 = vpack.c.bf16 %v653_v21, %v652_v20  ;;  %v1264_v25 = vpack.c.bf16 %v647_v24, %v646_v23  ;;  %v648_v26 = vld [vmem:[%s2267_s18 + $0x10] sm:$0xff]  ;;  %v649_v27 = vld [vmem:[%s2267_s18 + $0x18] sm:$0xff]  ;;  %v798_v31 = vld [vmem:[%s421_s27] sm:$0xff] }
  0xf3   : > { %1257 = vmatprep.subr.bf16.mxu1 %v1789_v0  ;;  %1269 = vmatprep.subr.bf16.mxu0 %v1789_v0  ;;  %v1267_v28 = vpack.c.bf16 %v649_v27, %v648_v26  ;;  %v799_v32 = vld [vmem:[%s421_s27 + $0x8] sm:$0xff]  ;;  %v800_v33 = vld [vmem:[%s421_s27 + $0x10] sm:$0xff]  ;;  %v801_v35 = vld [vmem:[%s421_s27 + $0x18] sm:$0xff] }
  0xf4   : > { %v1270_v34 = vpack.c.bf16 %v799_v32, %v798_v31  ;;  %v1273_v36 = vpack.c.bf16 %v801_v35, %v800_v33 }
  0xf7   : > { %p1169_p1 = scmp.ne.s32.totalorder %s2547_s26, 0 }
  0xf8   : > { %v1792_v42 = vmov (!%p1169_p1), 0.0  }
  0xf9   : > { %1208 = vmatmul.mubr.msk.f32.vlgmr.msra.gmra.mrb[0].mxu0 %vm480_vm1, %v477_v5  ;;  %879 = vst.msk [vmem:[#allocation2] sm:$0xff] (!%p1169_p1), %vm480_vm1, %v1792_v42 }
  0xfa   : > { %1247 = vmatprep.mubr.msk.f32.mxu0 %vm1790_vm0, %v1791_v1  ;;  %1271 = vmatpush3.bf16.msra.mxu0 %v1270_v34 }
  0xfb   : > { %1272 = vmatprep.subr.bf16.mxu0 %v1789_v0 }
  0xfe   : > { %1274 = vmatpush3.bf16.msra.mxu0 %v1273_v36 }
 0x1cc   : > { %v556_v6 = vpop.f32.mrb[0].mxu0 }
 0x1cd   : > { %v1209_v7 = vpop.f32.mrb[1].mxu0  ;;  %v561_v8 = vsel %vm560_vm3, %v556_v6, -inf }
 0x1ce   : > { %562 = vmax.xlane.f32.xlu0 %v561_v8 }
 0x25b   : > { %v563_v9 = vpop.xlane.xlu0 %562 }
 0x25c   : > { %v564_v10 = vsub.f32 %v556_v6, %v563_v9 }
 0x25e   : > { %v565_v11 = vmul.f32 1.442695, %v564_v10 }
 0x260   : > { %1434 = vpow2.f32 %v565_v11 }
 0x26a   : > { %v1435_v12 = vpop.eup %1434 }
 0x26b   : > { %v567_v13 = vsel %vm560_vm3, %v1435_v12, 0.0 }
 0x26c   : > { %568 = vadd.xlane.f32.xlu0 %v567_v13 }
 0x2f9   : > { %v569_v14 = vpop.xlane.xlu0 %568 }
 0x2fa   : > { %1436 = vrcp.f32 %v569_v14 }
 0x304   : > { %v1437_v17 = vpop.eup %1436 }
 0x305   : > { %v571_v19 = vmul.f32 %v1437_v17, %v1435_v12 }
 0x307   : > { %572 = vst.msk [vmem:[%s2298_s9] sm:$0xff] %vm560_vm3, %v571_v19  ;;  %1215 = vmatmul.mubr.msk.f32.vlgmr.msra.gmra.mrb[0].mxu1 %vm560_vm3, %v571_v19 }
 0x308   : > { %1259 = vmatpush3.bf16.msra.mxu1 %v1258_v18  ;;  %1225 = vmatprep.mubr.msk.f32.mxu1 %vm1790_vm0, %v1791_v1 }
 0x309   : > { %1260 = vmatprep.subr.bf16.mxu1 %v1789_v0 }
 0x30c   : > { %1262 = vmatpush3.bf16.msra.mxu1 %v1261_v22 }
 0x30d   : > { %1263 = vmatprep.subr.bf16.mxu1 %v1789_v0 }
 0x30f   : > { %1226 = vmatmul.mubr.msk.f32.vlgmr.msra.gmra.mrb[2].mxu1 %vm480_vm1, %v477_v5 }
 0x310   : > { %1265 = vmatpush3.bf16.msra.mxu1 %v1264_v25  ;;  %1236 = vmatprep.mubr.msk.f32.mxu1 %vm1790_vm0, %v1791_v1 }
 0x311   : > { %1266 = vmatprep.subr.bf16.mxu1 %v1789_v0 }
 0x314   : > { %1268 = vmatpush3.bf16.msra.mxu1 %v1267_v28 }
 0x3da   : > { %v642_v29 = vpop.f32.mrb[0].mxu1 }
 0x3db   : > { %v1216_v30 = vpop.f32.mrb[1].mxu1  ;;  %1237 = vmatmul.mubr.msk.f32.vlgmr.msra.gmra.mrb[2].mxu1 %vm480_vm1, %v642_v29 }
 0x4ae   : > { %v793_v37 = vpop.f32.mrb[2].mxu1 }
 0x4af   : > { %1438 = vtanh.f32 %v793_v37  ;;  %v1238_v38 = vpop.f32.mrb[3].mxu1 }
 0x4b9   : > { %v1439_v39 = vpop.eup %1438 }
 0x4ba   : > { %1248 = vmatmul.mubr.msk.f32.vlgmr.msra.gmra.mrb[2].mxu0 %vm480_vm1, %v1439_v39 }
 0x588   : > { %878 = sbr.rel (%p1169_p1) target bundleno = 1423 (0x58f), region = 68 }
 0x58d   : > { %v871_v40 = vpop.f32.mrb[2].mxu0 }
 0x58e   : > { %v1249_v41 = vpop.f32.mrb[3].mxu0 }
 0x58f PF: > { %v880_v43 = vld [vmem:[#allocation2] sm:$0xff]  ;;  %s2548_s14 = sld [smem:[#allocation26_spill]] }
 0x590   : > { %v881_v44 = vadd.f32 %v880_v43, %v871_v40 }
 0x592   : > { %882 = vst.msk [vmem:[#allocation2] sm:$0xff] %vm480_vm1, %v881_v44 }
 0x595   : > { %p1170_p0 = scmp.ne.s32.totalorder %s2548_s14, 1 }
 0x596   : > { %s2549_s10 = sld [smem:[#allocation46_spill]] (!%p1170_p0) }
 0x597   : > { %886 = sbr.rel (%p1170_p0) target bundleno = 1440 (0x5a0), region = 72 }
 0x599   : > { %v887_v45 = vld [vmem:[#allocation2] sm:$0xff] (!%p1170_p0) }
 0x59c   : > { %v1171_v46 = vld [vmem:[%s2549_s10] ss:$0 sm:$0xff] (!%p1170_p0) }
 0x59d   : > { %v895_v47 = vadd.f32 (!%p1170_p0), %v1171_v46, %v887_v45 }
 0x59f   : > { %896 = vst.msk [vmem:[%s469_s21] sm:$0xff] %vm480_vm1, %v895_v47 }
 0x5a0 PF: > { %s2550_s30 = sld [smem:[#allocation27_spill]]  ;;  %s2551_s24 = sld [smem:[#allocation37_spill]] }
 0x5a1   : > { %s2552_s7 = sld [smem:[#allocation47_spill]]  ;;  %s916_s4 = sshll.u32 %s469_s21, 4  ;;  %s917_s4 = int_to_ptr.vmem [resolvable:$true] %s916_s4 }
 0x5a2   : > { %s898_s13 = scalar_lea.sflag [#allocation5], %s2242_s0  ;;  %s1590_s11 = scalar_lea.vmem %s917_s4, 128 }
 0x5a3   : > { %p1591_p10 = scmp.ne.s32.totalorder %s917_s4, %s1590_s11  ;;  %s1793_s17 = smov [#allocation12]  }
 0x5a4   : > { %s1594_s19 = sshll.u32 %s1793_s17, 4  ;;  %s1595_s19 = int_to_ptr.vmem [resolvable:$false] %s1594_s19 }
 0x5a5   : > { %s1596_s18 = scalar_lea.vmem %s1595_s19, 256  ;;  %p1597_p8 = scmp.lt.s32.totalorder %s917_s4, %s1595_s19 }
 0x5a6   : > { %s1174_s16 = sshll.u32 %s2550_s30, 7  ;;  %p2553_p4 = scmp.ne.s32.totalorder %s2551_s24, 0 }
 0x5a7   : > { %s2331_s12 = scalar_lea.hbm %s2552_s7, %s1174_s16  ;;  %p1598_p12 = scmp.lt.s32.totalorder %s1596_s18, %s1590_s11 }
 0x5a8   : > { %p1592_p11 = pnand %p1591_p10, %p2553_p4 }
 0x5a9   : > { %p1599_p2 = por %p1598_p12, %p1597_p8 }
 0x5aa   : > { %p1593_p13 = pneg %p1592_p11 }
 0x5ac   : > { %p1600_p9 = pnand %p1599_p2, %p1593_p13 }
 0x5ae   : > { %1603 = shalt.err (!%p1600_p9)
}
 0x5af   : > { %s1604_s0 = scalar_lea.hbm %s2331_s12, 128  ;;  %s1608_s22 = scalar_lea.hbm %s2552_s7, 256 }
 0x5b0   : > { %p1605_p6 = scmp.ne.s32.totalorder %s2331_s12, %s1604_s0  ;;  %p1609_p7 = scmp.lt.u32.totalorder %s2331_s12, %s2552_s7 }
 0x5b1   : > { %p1610_p1 = scmp.lt.u32.totalorder %s1608_s22, %s1604_s0  ;;  %p1612_p10 = scmp.lt.u32.totalorder %s1604_s0, %s2331_s12 }
 0x5b2   : > { %p1606_p5 = pnand %p1605_p6, %p2553_p4 }
 0x5b3   : > { %p1611_p0 = por %p1610_p1, %p1609_p7 }
 0x5b4   : > { %p1607_p3 = pneg %p1606_p5 }
 0x5b5   : > { %p1613_p11 = por %p1612_p10, %p1611_p0 }
 0x5b7   : > { %p1614_p13 = pnand %p1613_p11, %p1607_p3 }
 0x5b9   : > { %1617 = shalt.err (!%p1614_p13)
}
 0x5ba   : > { %s2554_s26 = sld [smem:[#allocation26_spill]]  ;;  %s2555_s14 = sld [smem:[#allocation39_spill]] }
 0x5bb   : > { %1287 = dma.vmem_to_hbm [thread:$0]  (%p2553_p4), %s917_s4, 128, %s2331_s12, %s898_s13  }
 0x5bc   : > { %s931_s5 = sshll.u32 %s2298_s9, 4  ;;  %s2556_s11 = sld [smem:[#allocation48_spill]]  ;;  %s2354_s5 = int_to_ptr.vmem [resolvable:$true] %s931_s5 }
 0x5bd   : > { %s903_s19 = scalar_lea.sflag [#allocation14], %s2256_s15  ;;  %s1618_s18 = scalar_lea.vmem %s2354_s5, 128 }
 0x5be   : > { %p1619_p8 = scmp.ne.s32.totalorder %s2354_s5, %s1618_s18  ;;  %s1794_s12 = smov [#allocation13]  }
 0x5bf   : > { %s1622_s4 = sshll.u32 %s1794_s12, 4  ;;  %s1623_s4 = int_to_ptr.vmem [resolvable:$false] %s1622_s4 }
 0x5c0   : > { %s1175_s3 = sshll.u32 %s2554_s26, 1  ;;  %p2558_p12 = scmp.ne.s32.totalorder %s2555_s14, 0 }
 0x5c1   : > { %s927_s10 = sadd.s32 %s2550_s30, %s1175_s3  ;;  %s1624_s9 = scalar_lea.vmem %s1623_s4, 256 }
 0x5c2   : > { %s1176_s16 = sshll.u32 %s927_s10, 7  ;;  %s2557_s17 = smov %s2556_s11 }
 0x5c3   : > { %s929_s24 = scalar_lea.hbm %s2556_s11, %s1176_s16  ;;  %p1620_p2 = pnand %p1619_p8, %p2558_p12 }
 0x5c4   : > { %p1625_p4 = scmp.lt.s32.totalorder %s2354_s5, %s1623_s4  ;;  %p1626_p6 = scmp.lt.s32.totalorder %s1624_s9, %s1618_s18 }
 0x5c5   : > { %p1621_p9 = pneg %p1620_p2 }
 0x5c6   : > { %p1627_p5 = por %p1626_p6, %p1625_p4 }
 0x5c8   : > { %p1628_p3 = pnand %p1627_p5, %p1621_p9 }
 0x5ca   : > { %1631 = shalt.err (!%p1628_p3)
}
 0x5cb   : > { %s1632_s30 = scalar_lea.hbm %s929_s24, 128  ;;  %s1636_s0 = scalar_lea.hbm %s2557_s17, 512 }
 0x5cc   : > { %p1633_p7 = scmp.ne.s32.totalorder %s929_s24, %s1632_s30  ;;  %p1637_p10 = scmp.lt.u32.totalorder %s929_s24, %s2557_s17 }
 0x5cd   : > { %p1638_p11 = scmp.lt.u32.totalorder %s1636_s0, %s1632_s30  ;;  %p1640_p8 = scmp.lt.u32.totalorder %s1632_s30, %s929_s24 }
 0x5ce   : > { %p1634_p1 = pnand %p1633_p7, %p2558_p12 }
 0x5cf   : > { %p1639_p13 = por %p1638_p11, %p1637_p10 }
 0x5d0   : > { %p1635_p0 = pneg %p1634_p1 }
 0x5d1   : > { %p1641_p2 = por %p1640_p8, %p1639_p13 }
 0x5d3   : > { %p1642_p9 = pnand %p1641_p2, %p1635_p0 }
 0x5d5   : > { %1645 = shalt.err (!%p1642_p9)
}
 0x5d6   : > { %1288 = dma.vmem_to_hbm [thread:$0]  (%p2558_p12), %s2354_s5, 128, %s929_s24, %s903_s19  }
 0x5d7 PF: > { %s2559_s22 = sld [smem:[#allocation30_spill]]  ;;  %s2560_s27 = sld [smem:[#allocation24_spill]] }
 0x5d8   : > { %s2561_s21 = sld [smem:[#allocation38_spill]] }
 0x5dd   : > { %p1315_p4 = scmp.ge.s32.totalorder %s2559_s22, 2  ;;  %s943_s26 = sand.u32 1, %s2560_s27  }
 0x5de   : > { %p2562_p6 = scmp.ne.s32.totalorder %s2561_s21, 0  ;;  %s944_s3 = scalar_lea.sflag [#allocation5], %s943_s26 }
 0x5e0   : > { %p1308_p5 = pnand %p1315_p4, %p2562_p6 }
 0x5e2   : > { %1719 = dma.done.wait (!%p1308_p5), %s944_s3, 128  }
 0x5e3   : > { %1721 = vsyncadd (!%p1308_p5), %s944_s3, 4294967168  ;;  %s2563_s10 = sld [smem:[#allocation22_spill]]  ;;  %s2564_s16 = sld [smem:[#allocation40_spill]] }
 0x5e9   : > { %s952_s2 = sand.u32 1, %s2563_s10   ;;  %p2565_p3 = scmp.ne.s32.totalorder %s2564_s16, 0 }
 0x5ea   : > { %s953_s20 = scalar_lea.sflag [#allocation14], %s952_s2 }
 0x5eb   : > { %p1311_p7 = pnand %p1315_p4, %p2565_p3 }
 0x5ed   : > { %1723 = dma.done.wait (!%p1311_p7), %s953_s20, 128  }
 0x5ee   : > { %1725 = vsyncadd (!%p1311_p7), %s953_s20, 4294967168  ;;  %s33_s14 = sadd.s32 1, %s2559_s22   ;;  %s2567_s11 = sld [smem:[#allocation21_spill]] }
 0x5ef   : > { %p2384_p12 = scmp.ge.s32.totalorder %s33_s14, 6   ;;  %s2568_s26 = sld [smem:[#allocation34_spill]] }
 0x5f0   : > { %s2569_s19 = sld [smem:[#allocation23_spill]]  ;;  %s2570_s29 = sld [smem:[#allocation33_spill]] }
 0x5f1   : > { %s2571_s18 = sld [smem:[#allocation25_spill]]  ;;  %s2572_s9 = sld [smem:[#allocation35_spill]] }
 0x5f2   : > { %s2573_s10 = sld [smem:[#allocation28_spill]]  ;;  %s2574_s12 = sld [smem:[#allocation29_spill]] }
 0x5f3   : > { %s2575_s4 = sld [smem:[#allocation31_spill]]  ;;  %s2576_s13 = sld [smem:[#allocation32_spill]] }
 0x5f4   : > { %s2577_s24 = smov %s1732_s25  ;;  %s2578_s25 = smov %s2567_s11 }
 0x5f5   : > { %s2579_s27 = smov %s1744_s28  ;;  %s2581_s30 = smov %s1756_s8 }
 0x5f6   : > { %s2580_s28 = smov %s2569_s19  ;;  %32 = sbr.rel (!%p2384_p12) target bundleno = 25 (0x19), region = 162 }
 0x5f7   : > { %s2582_s8 = smov %s2571_s18 }
 0x5f8   : > { %s2583_s11 = smov %s2574_s12 }
 0x5f9   : > { %s2584_s12 = smov %s2575_s4 }
 0x5fd   :  { %958 = vsyncpa [#allocation4], 1 }
 0x5fe   :  { %960 = vsyncpa [#allocation4 + $0x1], 1 }
 0x5ff   :  { %961 = vsyncpa [#allocation7], 1 }
 0x600   :  { %963 = vsyncpa [#allocation7 + $0x1], 1 }
 0x601   :  { %964 = vsyncpa [#allocation10], 1 }
 0x602   :  { %966 = vsyncpa [#allocation10 + $0x1], 1 }
 0x603   :  { %967 = vsyncpa [#allocation5], 1 }
 0x604   :  { %969 = vsyncpa [#allocation5 + $0x1], 1 }
 0x605   :  { %970 = vsyncpa [#allocation14], 1 }
 0x606   :  { %972 = vsyncpa [#allocation14 + $0x1], 1 }

</bundles_post_ra>
